<compile_context>
chip_gen: v6e
topology: v6e:2x2x1
jax: 0.10.0
libtpu: 0.0.40
codegen_flags: <defaults>
</compile_context>

<pallas_src>
import jax
import jax.numpy as jnp
from jax.experimental import pallas as pl
from jax.experimental.pallas import tpu as pltpu

_MiB = 1024 * 1024


# --------------------------------- kernel ------------------------------------
def ffn_kernel(x_ref, attn_ref, w_ref, b_ref, g_ref, beta_ref, o_ref):
    """out = LayerNorm(x @ W + b + attn).  Grid = (row tiles, K tiles)."""
    k = pl.program_id(1)

    # o_ref (f32) is resident in VMEM across the K sweep -> it IS the accumulator.
    @pl.when(k == 0)
    def _init():
        o_ref[...] = attn_ref[...] + b_ref[...]          # residual + bias up front

    # bf16 x bf16 -> f32 on the MXU; activations cast per-tile on the VPU
    # (hidden under the MXU), so no wrapper-side HBM cast pass is needed.
    o_ref[...] += jnp.dot(x_ref[...].astype(jnp.bfloat16), w_ref[...],
                          preferred_element_type=jnp.float32)

    @pl.when(k == pl.num_programs(1) - 1)
    def _layernorm():
        y = o_ref[...]
        inv_h = 1.0 / y.shape[-1]
        mu = jnp.sum(y, axis=-1, keepdims=True) * inv_h
        d = y - mu
        var = jnp.sum(d * d, axis=-1, keepdims=True) * inv_h   # biased var (PyTorch LN)
        o_ref[...] = (d * jax.lax.rsqrt(var + 1e-5)) * g_ref[...] + beta_ref[...]


# ------------------------------ tile selection --------------------------------
def _vmem_capacity_bytes():
    try:
        return int(pltpu.get_tpu_info().vmem_capacity_bytes)
    except Exception:
        return 64 * _MiB          # v7x physical — the smallest across generations


def _tile_bytes(tm, tk, H):
    # double-buffered streamed inputs + resident f32 output/accumulator blocks
    return (2 * tm * tk * 4       # x tiles   (f32, cast in-kernel)
            + 2 * tm * H * 4      # attn tiles (f32)
            + 2 * tk * H * 2      # W tiles    (bf16)
            + 2 * tm * H * 4      # output/accumulator tiles (f32)
            + 8 * H * 4)          # bias / gamma / beta (tiny)


def _pick_tiles(M, I, H, budget):
    # K tile: prefer a divisor of inter_size (no K padding), bounded at 1024.
    if I <= 1024:
        tk, i_pad = I, I
    else:
        tk = None
        for cand in (1024, 512, 256, 128):
            if I % cand == 0:
                tk, i_pad = cand, I
                break
        if tk is None:                                  # ragged K: zero-pad (rare)
            tk = 512
            i_pad = (I + tk - 1) // tk * tk

    # Row tile: as large as the VMEM budget allows; keep >= 2 row tiles for the
    # "parallel" axis to shard across v7x's two TensorCores.
    if M <= 256:
        tm = M                                          # single tile == full dim
    else:
        tm = 128
        for cand in (768, 512, 384, 256):
            if M >= 2 * cand and _tile_bytes(cand, tk, H) <= budget:
                tm = cand
                break

    # Shrink tk if the chosen pair still overflows the budget (very large H).
    while tk > 128 and _tile_bytes(tm, tk, H) > budget and i_pad % (tk // 2) == 0:
        tk //= 2
    return tm, tk, i_pad


# --------------------------------- wrapper -----------------------------------
def ffn_pallas(inp, attn_output, params, w_bf16=None):
    """inp: (B, S, inter_size) f32; attn_output: (B, S, h_size) f32."""
    B, S, I = inp.shape
    H = attn_output.shape[-1]
    M = B * S

    x2 = inp.reshape(M, I)                 # free views (contiguous), no HBM copy
    a2 = attn_output.reshape(M, H)

    vmem_cap = _vmem_capacity_bytes()
    vmem_limit = max(32 * _MiB, min(vmem_cap - 8 * _MiB, 100 * _MiB))
    budget = vmem_limit - 8 * _MiB

    tm, tk, i_pad = _pick_tiles(M, I, H, budget)

    if i_pad != I:                         # rare ragged-K fallback; zeros are exact
        x2 = jnp.pad(x2, ((0, 0), (0, i_pad - I)))

    # bf16 weight (Linear weight stored transposed: (inter_size, h_size), so the
    # kernel does x @ W == PyTorch x @ W.T).  Cache this once in a real model.
    if w_bf16 is None:
        w_bf16 = params["w"].astype(jnp.bfloat16)
    if i_pad != I:
        w_bf16 = jnp.pad(w_bf16, ((0, i_pad - I), (0, 0)))

    n_i = pl.cdiv(M, tm)
    n_k = i_pad // tk
    grid = (n_i, n_k)

    cost = pl.CostEstimate(
        flops=2 * M * I * H,
        transcendentals=0,
        bytes_accessed=int(M * I * 4 + M * H * 4      # x, attn reads
                           + n_i * I * H * 2          # W streamed once per row tile
                           + M * H * 4),              # output write
    )

    out = pl.pallas_call(
        ffn_kernel,
        out_shape=jax.ShapeDtypeStruct((M, H), jnp.float32),
        grid=grid,
        in_specs=[
            pl.BlockSpec((tm, tk), lambda i, k: (i, k)),   # x            (f32)
            pl.BlockSpec((tm, H), lambda i, k: (i, 0)),    # attn residual (f32)
            pl.BlockSpec((tk, H), lambda i, k: (k, 0)),    # W            (bf16)
            pl.BlockSpec((1, H), lambda i, k: (0, 0)),     # bias
            pl.BlockSpec((1, H), lambda i, k: (0, 0)),     # LN gamma
            pl.BlockSpec((1, H), lambda i, k: (0, 0)),     # LN beta
        ],
        out_specs=pl.BlockSpec((tm, H), lambda i, k: (i, 0)),
        compiler_params=pltpu.CompilerParams(
            dimension_semantics=("parallel", "arbitrary"),
            vmem_limit_bytes=vmem_limit,
        ),
        cost_estimate=cost,
    )(x2, a2, w_bf16, params["b"], params["g"], params["beta"])

    return out.reshape(B, S, H)


# ------------------------------ pure-JAX reference ---------------------------
def reference_ffn(inp, attn_output, params):
    y = inp @ params["w"] + params["b"] + attn_output
    mu = jnp.mean(y, axis=-1, keepdims=True)
    var = jnp.mean((y - mu) ** 2, axis=-1, keepdims=True)
    return (y - mu) / jnp.sqrt(var + 1e-5) * params["g"] + params["beta"]


# ----------------------------------- main ------------------------------------
if __name__ == "__main__":
    B, S, H, I = 2, 8, 32, 64   # batch, seq, h_size, inter_size

    key = jax.random.PRNGKey(0)
    k1, k2, k3, k4, k5, k6 = jax.random.split(key, 6)
    scale = 0.05
    params = {
        "w": scale * jax.random.normal(k1, (I, H), jnp.float32),     # (inter, h) == W.T
        "b": scale * jax.random.normal(k2, (1, H), jnp.float32),
        "g": 1.0 + 0.1 * jax.random.normal(k3, (1, H), jnp.float32),
        "beta": 0.1 * jax.random.normal(k4, (1, H), jnp.float32),
    }
    inp = jax.random.normal(k5, (B, S, I), jnp.float32)
    attn_output = jax.random.normal(k6, (B, S, H), jnp.float32)

    out = jax.block_until_ready(ffn_pallas(inp, attn_output, params))
    ref = reference_ffn(inp, attn_output, params)

    assert out.shape == (B, S, H)
    # bf16 MXU operands vs f32 reference -> loosened tolerance (documented).
    assert jnp.allclose(out, ref, atol=2e-2, rtol=2e-2), "mismatch vs pure-JAX f32 reference"

    print("KERNEL_OK")
</pallas_src>

<mosaic_0001>
module attributes {stable_mosaic.version = 11 : i64} {
  func.func @ffn_kernel(%arg0: i32, %arg1: i32, %arg2: memref<16x64xf32, #tpu.memory_space<vmem>>, %arg3: memref<16x32xf32, #tpu.memory_space<vmem>>, %arg4: memref<64x32xbf16, #tpu.memory_space<vmem>>, %arg5: memref<1x32xf32, #tpu.memory_space<vmem>>, %arg6: memref<1x32xf32, #tpu.memory_space<vmem>>, %arg7: memref<1x32xf32, #tpu.memory_space<vmem>>, %arg8: memref<16x32xf32, #tpu.memory_space<vmem>>) attributes {dimension_semantics = [#tpu.dimension_semantics<parallel>, #tpu.dimension_semantics<arbitrary>], iteration_bounds = array<i64: 1, 1>, scalar_prefetch = 0 : i64, scratch_operands = 0 : i64, tpu.core_type = #tpu.core_type<tc>, window_params = [{transform_indices = @transform_0, window_bounds = array<i64: 16, 64>}, {transform_indices = @transform_1, window_bounds = array<i64: 16, 32>}, {transform_indices = @transform_2, window_bounds = array<i64: 64, 32>}, {pipeline_mode = #tpu.pipeline_mode<synchronous>, transform_indices = @transform_3, window_bounds = array<i64: 1, 32>}, {pipeline_mode = #tpu.pipeline_mode<synchronous>, transform_indices = @transform_4, window_bounds = array<i64: 1, 32>}, {pipeline_mode = #tpu.pipeline_mode<synchronous>, transform_indices = @transform_5, window_bounds = array<i64: 1, 32>}, {transform_indices = @transform_6, window_bounds = array<i64: 16, 32>}]} {
    %c0_i32 = arith.constant 0 : i32
    %0 = arith.cmpi eq, %arg1, %c0_i32 : i32
    %1 = arith.extui %0 : i1 to i32
    %c0_i32_0 = arith.constant 0 : i32
    %2 = arith.cmpi ne, %1, %c0_i32_0 : i32
    scf.if %2 {
      %c0_10 = arith.constant 0 : index
      %c0_11 = arith.constant 0 : index
      %13 = vector.load %arg3[%c0_10, %c0_11] : memref<16x32xf32, #tpu.memory_space<vmem>>, vector<16x32xf32>
      %c0_12 = arith.constant 0 : index
      %c0_13 = arith.constant 0 : index
      %14 = vector.load %arg5[%c0_12, %c0_13] : memref<1x32xf32, #tpu.memory_space<vmem>>, vector<1x32xf32>
      %15 = vector.broadcast %14 : vector<1x32xf32> to vector<16x32xf32>
      %16 = arith.addf %13, %15 : vector<16x32xf32>
      %c0_14 = arith.constant 0 : index
      %c0_15 = arith.constant 0 : index
      %17 = vector.load %arg8[%c0_14, %c0_15] : memref<16x32xf32, #tpu.memory_space<vmem>>, vector<16x32xf32>
      tpu.vector_store %arg8[%c0_14, %c0_15], %16 {strides = array<i32>} : memref<16x32xf32, #tpu.memory_space<vmem>>, vector<16x32xf32>,
    } else {
    }
    %c0 = arith.constant 0 : index
    %c0_1 = arith.constant 0 : index
    %3 = vector.load %arg8[%c0, %c0_1] : memref<16x32xf32, #tpu.memory_space<vmem>>, vector<16x32xf32>
    %c0_2 = arith.constant 0 : index
    %c0_3 = arith.constant 0 : index
    %4 = vector.load %arg2[%c0_2, %c0_3] : memref<16x64xf32, #tpu.memory_space<vmem>>, vector<16x64xf32>
    %5 = arith.truncf %4 : vector<16x64xf32> to vector<16x64xbf16>
    %c0_4 = arith.constant 0 : index
    %c0_5 = arith.constant 0 : index
    %6 = vector.load %arg4[%c0_4, %c0_5] : memref<64x32xbf16, #tpu.memory_space<vmem>>, vector<64x32xbf16>
    %cst = arith.constant dense<0.000000e+00> : vector<16x32xf32>
    %7 = tpu.matmul %5, %6, %cst {dimension_numbers = #tpu.dot_dimension_numbers<[1], [0], [0], [1], [0, 0, 1, 1], [], []>} : vector<16x64xbf16>, vector<64x32xbf16>, vector<16x32xf32> -> vector<16x32xf32>
    %8 = arith.addf %3, %7 : vector<16x32xf32>
    %c0_6 = arith.constant 0 : index
    %c0_7 = arith.constant 0 : index
    %9 = vector.load %arg8[%c0_6, %c0_7] : memref<16x32xf32, #tpu.memory_space<vmem>>, vector<16x32xf32>
    tpu.vector_store %arg8[%c0_6, %c0_7], %8 {strides = array<i32>} : memref<16x32xf32, #tpu.memory_space<vmem>>, vector<16x32xf32>,
    %c0_i32_8 = arith.constant 0 : i32
    %10 = arith.cmpi eq, %arg1, %c0_i32_8 : i32
    %11 = arith.extui %10 : i1 to i32
    %c0_i32_9 = arith.constant 0 : i32
    %12 = arith.cmpi ne, %11, %c0_i32_9 : i32
    scf.if %12 {
      %c0_10 = arith.constant 0 : index
      %c0_11 = arith.constant 0 : index
      %13 = vector.load %arg8[%c0_10, %c0_11] : memref<16x32xf32, #tpu.memory_space<vmem>>, vector<16x32xf32>
      %cst_12 = arith.constant dense<0.000000e+00> : vector<16xf32>
      %14 = vector.multi_reduction <add>, %13, %cst_12 [1] : vector<16x32xf32> to vector<16xf32>
      %15 = vector.shape_cast %14 : vector<16xf32> to vector<16x1xf32>
      %cst_13 = arith.constant 3.125000e-02 : f32
      %16 = vector.broadcast %cst_13 : f32 to vector<16x1xf32>
      %17 = arith.mulf %15, %16 : vector<16x1xf32>
      %18 = vector.broadcast %17 : vector<16x1xf32> to vector<16x32xf32>
      %19 = arith.subf %13, %18 : vector<16x32xf32>
      %20 = arith.mulf %19, %19 : vector<16x32xf32>
      %cst_14 = arith.constant dense<0.000000e+00> : vector<16xf32>
      %21 = vector.multi_reduction <add>, %20, %cst_14 [1] : vector<16x32xf32> to vector<16xf32>
      %22 = vector.shape_cast %21 : vector<16xf32> to vector<16x1xf32>
      %cst_15 = arith.constant 3.125000e-02 : f32
      %23 = vector.broadcast %cst_15 : f32 to vector<16x1xf32>
      %24 = arith.mulf %22, %23 : vector<16x1xf32>
      %cst_16 = arith.constant 9.99999974E-6 : f32
      %25 = vector.broadcast %cst_16 : f32 to vector<16x1xf32>
      %26 = arith.addf %24, %25 : vector<16x1xf32>
      %27 = math.rsqrt %26 : vector<16x1xf32>
      %28 = vector.broadcast %27 : vector<16x1xf32> to vector<16x32xf32>
      %29 = arith.mulf %19, %28 : vector<16x32xf32>
      %c0_17 = arith.constant 0 : index
      %c0_18 = arith.constant 0 : index
      %30 = vector.load %arg6[%c0_17, %c0_18] : memref<1x32xf32, #tpu.memory_space<vmem>>, vector<1x32xf32>
      %31 = vector.broadcast %30 : vector<1x32xf32> to vector<16x32xf32>
      %32 = arith.mulf %29, %31 : vector<16x32xf32>
      %c0_19 = arith.constant 0 : index
      %c0_20 = arith.constant 0 : index
      %33 = vector.load %arg7[%c0_19, %c0_20] : memref<1x32xf32, #tpu.memory_space<vmem>>, vector<1x32xf32>
      %34 = vector.broadcast %33 : vector<1x32xf32> to vector<16x32xf32>
      %35 = arith.addf %32, %34 : vector<16x32xf32>
      %c0_21 = arith.constant 0 : index
      %c0_22 = arith.constant 0 : index
      %36 = vector.load %arg8[%c0_21, %c0_22] : memref<16x32xf32, #tpu.memory_space<vmem>>, vector<16x32xf32>
      tpu.vector_store %arg8[%c0_21, %c0_22], %35 {strides = array<i32>} : memref<16x32xf32, #tpu.memory_space<vmem>>, vector<16x32xf32>,
    } else {
    }
    return
  }
  func.func @transform_0(%arg0: i32, %arg1: i32) -> (i32, i32) {
    %c0_i32 = arith.constant 0 : i32
    return %arg0, %arg1 : i32, i32
  }
  func.func @transform_1(%arg0: i32, %arg1: i32) -> (i32, i32) {
    %c0_i32 = arith.constant 0 : i32
    %c0_i32_0 = arith.constant 0 : i32
    return %arg0, %c0_i32 : i32, i32
  }
  func.func @transform_2(%arg0: i32, %arg1: i32) -> (i32, i32) {
    %c0_i32 = arith.constant 0 : i32
    %c0_i32_0 = arith.constant 0 : i32
    return %arg1, %c0_i32 : i32, i32
  }
  func.func @transform_3(%arg0: i32, %arg1: i32) -> (i32, i32) {
    %c0_i32 = arith.constant 0 : i32
    %c0_i32_0 = arith.constant 0 : i32
    %c0_i32_1 = arith.constant 0 : i32
    return %c0_i32, %c0_i32_0 : i32, i32
  }
  func.func @transform_4(%arg0: i32, %arg1: i32) -> (i32, i32) {
    %c0_i32 = arith.constant 0 : i32
    %c0_i32_0 = arith.constant 0 : i32
    %c0_i32_1 = arith.constant 0 : i32
    return %c0_i32, %c0_i32_0 : i32, i32
  }
  func.func @transform_5(%arg0: i32, %arg1: i32) -> (i32, i32) {
    %c0_i32 = arith.constant 0 : i32
    %c0_i32_0 = arith.constant 0 : i32
    %c0_i32_1 = arith.constant 0 : i32
    return %c0_i32, %c0_i32_0 : i32, i32
  }
  func.func @transform_6(%arg0: i32, %arg1: i32) -> (i32, i32) {
    %c0_i32 = arith.constant 0 : i32
    %c0_i32_0 = arith.constant 0 : i32
    return %arg0, %c0_i32 : i32, i32
  }
}

</mosaic_0001>

<bundles_post_ra>
// kernel: tpu_custom_call.1
= control target key start
LH: loop header
LB: loop body
LE: loop exit
PB: predicated region body
PF: predicated region fallthrough
CT: control target
= control target key end

     0   :  { %v257_v1 = vmov 0.0   ;;  %vm258_vm0 = vmmov 0   ;;  %vm40_vm1 = vcmask 261120   ;;  %s343_s0 = inlined_call_operand.vmem [shape: f32[16,64], index: 0, kind: input, shape index: {}]   ;;  %s344_s1 = inlined_call_operand.vmem [shape: f32[16,32], index: 1, kind: input, shape index: {}]   ;;  %s345_s2 = inlined_call_operand.vmem [shape: bf16[64,32], index: 2, kind: input, shape index: {}]   ;;  %s346_s3 = inlined_call_operand.vmem [shape: f32[1,32], index: 3, kind: input, shape index: {}]   ;;  %s347_s4 = inlined_call_operand.vmem [shape: f32[1,32], index: 4, kind: input, shape index: {}]   ;;  %s348_s5 = inlined_call_operand.vmem [shape: f32[1,32], index: 5, kind: input, shape index: {}]   ;;  %s349_s6 = inlined_call_operand.hbm [shape: f32[16,32], index: 6, kind: output, shape index: {}]  }
   0x1   :  { %v227_v0 = vld [vmem:[%s345_s2 + $0x18] sm:$0xff]   ;;  %210 = vmatprep.subr.bf16.mxu0 %v257_v1  ;;  %v228_v2 = vld [vmem:[%s345_s2 + $0x10] sm:$0xff]   ;;  %218 = vmatprep.mubr.msk.bf16.mxu0 %vm258_vm0, %v257_v1  ;;  %v29_v3 = vld [vmem:[%s344_s1] sm:$0xff] }
   0x2   :  { %211 = vmatpush3.bf16.msra.mxu0 %v227_v0  ;;  %v197_v4 = vld [vmem:[%s346_s3] ss:$0 sm:$0xff] }
   0x3   :  { %212 = vmatprep.subr.bf16.mxu0 %v257_v1 }
   0x4   :  { %11 = vsyncpa [#allocation3], 0  ;;  %v229_v5 = vld [vmem:[%s345_s2 + $0x8] sm:$0xff]   ;;  %v38_v6 = vadd.f32 %v197_v4, %v29_v3  ;;  %v230_v7 = vld [vmem:[%s345_s2] sm:$0xff]   ;;  %vm80_vm2 = vcmask 523264   ;;  %s259_s15 = smov [#allocation2]  }
   0x5   :  { %v45_v8 = vld [vmem:[%s343_s0] sm:$0xff]  ;;  %v46_v9 = vld [vmem:[%s343_s0 + $0x8] sm:$0xff]  ;;  %s186_s16 = sshll.u32 %s259_s15, 4  ;;  %s187_s16 = int_to_ptr.vmem [resolvable:$true] %s186_s16 }
   0x6   :  { %213 = vmatpush3.bf16.msra.mxu0 %v228_v2  ;;  %41 = vst.msk [vmem:[#allocation2] sm:$0xff] %vm40_vm1, %v38_v6  ;;  %v47_v10 = vpack.c.bf16 %v46_v9, %v45_v8  ;;  %v30_v11 = vld [vmem:[%s344_s1 + $0x8] sm:$0xff]  ;;  %v203_v42 = vld [vmem:[%s347_s4] ss:$0 sm:$0xff]  ;;  %s235_s17 = scalar_lea.vmem %s187_s16, 256  ;;  %p240_p1 = scmp.lt.s32.totalorder %s187_s16, %s187_s16 }
   0x7   :  { %214 = vmatprep.subr.bf16.mxu0 %v257_v1  ;;  %v39_v12 = vadd.f32 %v197_v4, %v30_v11  ;;  %v204_v44 = vld [vmem:[%s348_s5] ss:$0 sm:$0xff]  ;;  %p236_p0 = scmp.ne.s32.totalorder %s187_s16, %s235_s17  ;;  %p241_p2 = scmp.lt.s32.totalorder %s235_s17, %s235_s17 }
   0x9   :  { %42 = vst.msk [vmem:[#allocation2 + $0x8] sm:$0xff] %vm40_vm1, %v39_v12  ;;  %p242_p3 = por %p241_p2, %p240_p1 }
   0xa   :  { %215 = vmatpush3.bf16.msra.mxu0 %v229_v5 }
   0xb   :  { %216 = vmatprep.subr.bf16.mxu0 %v257_v1  ;;  %p243_p4 = pnand %p242_p3, %p236_p0 }
   0xd   :  { %v43_v13 = vld [vmem:[#allocation2] sm:$0xff] }
   0xe   :  { %217 = vmatpush3.bf16.msra.mxu0 %v230_v7 }
  0x10   :  { %v44_v17 = vld [vmem:[#allocation2 + $0x8] sm:$0xff] }
  0x11   :  { %219 = vmatmul.mubr.msk.bf16.vlgmr.msra.gmra.mxu0 %vm80_vm2, %v47_v10 }
  0xd1   :  { %v118_v14 = vpop.f32.mrf.mxu0 }
  0xd2   :  { %v125_v15 = vadd.f32 %v118_v14, %v43_v13 }
  0xd3   :  { %v220_v16 = vpop.f32.mrf.mxu0 }
  0xd4   :  { %128 = vst.msk [vmem:[#allocation2] sm:$0xff] %vm40_vm1, %v125_v15 }
  0xd5   :  { %v121_v18 = vpop.f32.mrf.mxu0 }
  0xd6   :  { %v126_v19 = vadd.f32 %v121_v18, %v44_v17 }
  0xd7   :  { %v221_v20 = vpop.f32.mrf.mxu0 }
  0xd8   :  { %129 = vst.msk [vmem:[#allocation2 + $0x8] sm:$0xff] %vm40_vm1, %v126_v19 }
  0xdb   :  { %v133_v21 = vld [vmem:[#allocation2] sm:$0xff] }
  0xdc   :  { %v135_v22 = vsel %vm40_vm1, %v133_v21, 0.0 }
  0xdd   :  { %136 = vadd.xlane.f32.xlu0 %v135_v22 }
  0xdf   :  { %v134_v23 = vld [vmem:[#allocation2 + $0x8] sm:$0xff] }
  0xe0   :  { %v138_v24 = vsel %vm40_vm1, %v134_v23, 0.0 }
  0xe1   :  { %139 = vadd.xlane.f32.xlu0 %v138_v24 }
 0x166   :  { %v137_v25 = vpop.xlane.xlu0 %136 }
 0x167   :  { %v141_v26 = vmul.f32 0.03125, %v137_v25 }
 0x169   :  { %v143_v27 = vsub.f32 %v133_v21, %v141_v26 }
 0x16a   :  { %v140_v28 = vpop.xlane.xlu0 %139 }
 0x16b   :  { %v142_v29 = vmul.f32 0.03125, %v140_v28  ;;  %v145_v30 = vmul.f32 %v143_v27, %v143_v27 }
 0x16d   :  { %v144_v31 = vsub.f32 %v134_v23, %v142_v29  ;;  %v147_v32 = vsel %vm40_vm1, %v145_v30, 0.0 }
 0x16e   :  { %148 = vadd.xlane.f32.xlu1 %v147_v32 }
 0x16f   :  { %v146_v33 = vmul.f32 %v144_v31, %v144_v31 }
 0x171   :  { %v150_v34 = vsel %vm40_vm1, %v146_v33, 0.0 }
 0x172   :  { %151 = vadd.xlane.f32.xlu1 %v150_v34 }
 0x1f7   :  { %v149_v35 = vpop.xlane.xlu1 %148 }
 0x1f8   :  { %v153_v36 = vmul.f32 0.03125, %v149_v35 }
 0x1fa   :  { %v155_v37 = vadd.f32 1e-05, %v153_v36 }
 0x1fb   :  { %v152_v38 = vpop.xlane.xlu1 %151 }
 0x1fc   :  { %231 = vrsqrt.f32 %v155_v37  ;;  %v154_v39 = vmul.f32 0.03125, %v152_v38 }
 0x1fe   :  { %v156_v40 = vadd.f32 1e-05, %v154_v39 }
 0x200   :  { %233 = vrsqrt.f32 %v156_v40 }
 0x209   :  { %v232_v41 = vpop.eup %231 }
 0x20a   :  { %v159_v43 = vmul.f32 %v232_v41, %v143_v27 }
 0x20c   :  { %v168_v45 = vmul.f32 %v203_v42, %v159_v43 }
 0x20d   :  { %v234_v46 = vpop.eup %233 }
 0x20e   :  { %v160_v47 = vmul.f32 %v234_v46, %v144_v31  ;;  %v177_v48 = vadd.f32 %v204_v44, %v168_v45 }
 0x210   :  { %v169_v49 = vmul.f32 %v203_v42, %v160_v47  ;;  %179 = vst.msk [vmem:[#allocation2] sm:$0xff] %vm40_vm1, %v177_v48 }
 0x212   :  { %v178_v50 = vadd.f32 %v204_v44, %v169_v49 }
 0x214   :  { %180 = vst.msk [vmem:[#allocation2 + $0x8] sm:$0xff] %vm40_vm1, %v178_v50 }
 0x215   :  { %246 = shalt.err (!%p243_p4)
}
 0x216   :  { %s260_s4 = smov 128   ;;  %s261_s5 = smov 8  }
 0x217   :  { %192 = dma.vmem_to_hbm [thread:$0]  %s187_s16, 256, %s349_s6, [#allocation3], %s260_s4, %s260_s4, %s261_s5  }
 0x218   :  { %255 = dma.done.wait [#allocation3], 256  }
 0x219   :  { %256 = vsyncadd [#allocation3], 4294967040 }
 0x21a   :  { %196 = vsyncpa [#allocation3], 1 }

</bundles_post_ra>
